<compile_context>
chip_gen: v5e
topology: v5e:2x2
jax: 0.10.0
libtpu: 0.0.40
codegen_flags: <defaults>
</compile_context>

<pallas_src>
import functools
import math

import jax
import jax.numpy as jnp
from jax.experimental import pallas as pl
from jax.experimental.pallas import tpu as pltpu

LANE = 128      # feature dims of the hidden layers are padded to this lane width
SUBLANE = 8     # batch tiles are rounded to a multiple of the sublane width
MAX_TB = 2048   # max batch-tile rows per grid step


def _round_up(n, m):
    return ((n + m - 1) // m) * m


def qnet_kernel(x_ref, w1_ref, w2_ref, w3_ref, b_ref, o_ref, *, h1p, h2p, act):
    # bf16 MXU matmuls with f32 accumulation; f32 VPU epilogue (bias + ReLU).
    # Bias reads are (1, N) tiles -> free sublane broadcast on the VPU.
    x = x_ref[...].astype(jnp.bfloat16)
    h1 = jnp.dot(x, w1_ref[...], preferred_element_type=jnp.float32)
    h1 = jnp.maximum(h1 + b_ref[0:1, :h1p], 0.0)
    h2 = jnp.dot(h1.astype(jnp.bfloat16), w2_ref[...],
                 preferred_element_type=jnp.float32)
    h2 = jnp.maximum(h2 + b_ref[1:2, :h2p], 0.0)
    out = jnp.dot(h2.astype(jnp.bfloat16), w3_ref[...],
                  preferred_element_type=jnp.float32)
    # Store only the real action lanes: the HBM-side (tb, act) region is a dense
    # contiguous span, so output HBM traffic is exactly the useful bytes.
    q = out[:, :act] + b_ref[2:3, :act]
    o_ref[...] = q.astype(o_ref.dtype)


def pack_params(params, state_size, action_size, hidden=(64, 64)):
    """One-time: lane-pad weights (cast to bf16 for the MXU) and pack biases (f32)."""
    h1, h2 = hidden
    h1p = _round_up(h1, LANE)
    h2p = _round_up(h2, LANE)
    ap = _round_up(action_size, LANE)
    bp = max(h1p, h2p, ap)

    w1 = jnp.zeros((state_size, h1p), jnp.bfloat16)
    w1 = w1.at[:, :h1].set(params["w1"].astype(jnp.bfloat16))
    w2 = jnp.zeros((h1p, h2p), jnp.bfloat16)
    w2 = w2.at[:h1, :h2].set(params["w2"].astype(jnp.bfloat16))
    w3 = jnp.zeros((h2p, ap), jnp.bfloat16)
    w3 = w3.at[:h2, :action_size].set(params["w3"].astype(jnp.bfloat16))

    b = jnp.zeros((SUBLANE, bp), jnp.float32)
    b = b.at[0, :h1].set(params["b1"].reshape(-1))
    b = b.at[1, :h2].set(params["b2"].reshape(-1))
    b = b.at[2, :action_size].set(params["b3"].reshape(-1))

    return {"w1": w1, "w2": w2, "w3": w3, "b": b,
            "action_size": action_size, "h1p": h1p, "h2p": h2p}


def q_network_forward(state, packed):
    """state: (B, state_size) float32 (or bf16). Returns (B, action_size) float32."""
    x = state
    w1, w2, w3, b = packed["w1"], packed["w2"], packed["w3"], packed["b"]
    h1p, h2p = packed["h1p"], packed["h2p"]
    action_size = packed["action_size"]

    B, S = x.shape
    # Split mid-size batches into >= 2 grid steps so the "parallel" batch axis can be
    # sharded across v7x's two TensorCores; cap at MAX_TB for HBM-roofline tiles.
    tb = min(MAX_TB, max(SUBLANE, _round_up(pl.cdiv(B, 2), SUBLANE)))
    grid = (pl.cdiv(B, tb),)   # no wrapper-side batch padding; boundary block is masked

    kernel = functools.partial(qnet_kernel, h1p=h1p, h2p=h2p, act=action_size)
    out = pl.pallas_call(
        kernel,
        out_shape=jax.ShapeDtypeStruct((B, action_size), jnp.float32),
        grid=grid,
        in_specs=[
            # Activation stream: one batch tile per grid step (contiguous HBM span).
            pl.BlockSpec((tb, S), lambda i: (i, 0)),
            # Weights / packed bias: full-array blocks, VMEM-resident across steps.
            pl.BlockSpec(w1.shape, lambda i: (0, 0)),
            pl.BlockSpec(w2.shape, lambda i: (0, 0)),
            pl.BlockSpec(w3.shape, lambda i: (0, 0)),
            pl.BlockSpec(b.shape, lambda i: (0, 0)),
        ],
        # Lane-narrow but HBM-dense output block (last dim == full array dim).
        out_specs=pl.BlockSpec((tb, action_size), lambda i: (i, 0)),
        compiler_params=pltpu.CompilerParams(
            dimension_semantics=("parallel",),
            vmem_limit_bytes=32 * 1024 * 1024,
        ),
    )(x, w1, w2, w3, b)

    return out


def init_params(key, state_size, action_size, hidden=(64, 64)):
    """Mirror nn.Linear's default U(-1/sqrt(fan_in), 1/sqrt(fan_in)) init (f32)."""
    dims = [state_size, hidden[0], hidden[1], action_size]
    params = {}
    keys = jax.random.split(key, 6)
    for i, (fan_in, fan_out) in enumerate(zip(dims[:-1], dims[1:])):
        bound = 1.0 / math.sqrt(fan_in)
        params[f"w{i + 1}"] = jax.random.uniform(
            keys[2 * i], (fan_in, fan_out), jnp.float32, -bound, bound)
        params[f"b{i + 1}"] = jax.random.uniform(
            keys[2 * i + 1], (fan_out,), jnp.float32, -bound, bound)
    return params


def q_network_reference(x, params):
    h1 = jnp.maximum(x @ params["w1"] + params["b1"], 0.0)
    h2 = jnp.maximum(h1 @ params["w2"] + params["b2"], 0.0)
    return h2 @ params["w3"] + params["b3"]


if __name__ == "__main__":
    key = jax.random.PRNGKey(0)
    k_param, k_small, k_big = jax.random.split(key, 3)

    state_size = 16
    action_size = 4
    hidden = (64, 64)

    params = init_params(k_param, state_size, action_size, hidden)
    packed = pack_params(params, state_size, action_size, hidden)

    # Small batch (single grid step, partial boundary block).
    batch = 8
    state = jax.random.normal(k_small, (batch, state_size), jnp.float32)
    out = jax.block_until_ready(q_network_forward(state, packed))
    ref = q_network_reference(state, params)
    assert out.shape == (batch, action_size)
    # bf16 MXU inputs / f32 accumulation -> compare at bf16-appropriate tolerance.
    assert jnp.allclose(out, ref, atol=2e-2, rtol=2e-2), jnp.max(jnp.abs(out - ref))

    # Larger batch exercising grid > 1 (two-core split) and a masked boundary block.
    batch2 = 300
    state2 = jax.random.normal(k_big, (batch2, state_size), jnp.float32)
    out2 = jax.block_until_ready(q_network_forward(state2, packed))
    ref2 = q_network_reference(state2, params)
    assert out2.shape == (batch2, action_size)
    assert jnp.allclose(out2, ref2, atol=2e-2, rtol=2e-2), jnp.max(jnp.abs(out2 - ref2))

    print("KERNEL_OK")
</pallas_src>

<mosaic_0001>
module attributes {stable_mosaic.version = 11 : i64} {
  func.func @qnet_kernel(%arg0: i32, %arg1: memref<8x16xf32, #tpu.memory_space<vmem>>, %arg2: memref<16x128xbf16, #tpu.memory_space<vmem>>, %arg3: memref<128x128xbf16, #tpu.memory_space<vmem>>, %arg4: memref<128x128xbf16, #tpu.memory_space<vmem>>, %arg5: memref<8x128xf32, #tpu.memory_space<vmem>>, %arg6: memref<8x4xf32, #tpu.memory_space<vmem>>) attributes {dimension_semantics = [#tpu.dimension_semantics<parallel>], iteration_bounds = array<i64: 1>, scalar_prefetch = 0 : i64, scratch_operands = 0 : i64, tpu.core_type = #tpu.core_type<tc>, window_params = [{transform_indices = @transform_0, window_bounds = array<i64: 8, 16>}, {pipeline_mode = #tpu.pipeline_mode<synchronous>, transform_indices = @transform_1, window_bounds = array<i64: 16, 128>}, {pipeline_mode = #tpu.pipeline_mode<synchronous>, transform_indices = @transform_2, window_bounds = array<i64: 128, 128>}, {pipeline_mode = #tpu.pipeline_mode<synchronous>, transform_indices = @transform_3, window_bounds = array<i64: 128, 128>}, {pipeline_mode = #tpu.pipeline_mode<synchronous>, transform_indices = @transform_4, window_bounds = array<i64: 8, 128>}, {transform_indices = @transform_5, window_bounds = array<i64: 8, 4>}]} {
    %c0 = arith.constant 0 : index
    %c0_0 = arith.constant 0 : index
    %0 = vector.load %arg1[%c0, %c0_0] : memref<8x16xf32, #tpu.memory_space<vmem>>, vector<8x16xf32>
    %1 = arith.truncf %0 : vector<8x16xf32> to vector<8x16xbf16>
    %c0_1 = arith.constant 0 : index
    %c0_2 = arith.constant 0 : index
    %2 = vector.load %arg2[%c0_1, %c0_2] : memref<16x128xbf16, #tpu.memory_space<vmem>>, vector<16x128xbf16>
    %cst = arith.constant dense<0.000000e+00> : vector<8x128xf32>
    %3 = tpu.matmul %1, %2, %cst {dimension_numbers = #tpu.dot_dimension_numbers<[1], [0], [0], [1], [0, 0, 1, 1], [], []>} : vector<8x16xbf16>, vector<16x128xbf16>, vector<8x128xf32> -> vector<8x128xf32>
    %c0_3 = arith.constant 0 : index
    %c0_4 = arith.constant 0 : index
    %4 = vector.load %arg5[%c0_3, %c0_4] : memref<8x128xf32, #tpu.memory_space<vmem>>, vector<1x128xf32>
    %5 = vector.broadcast %4 : vector<1x128xf32> to vector<8x128xf32>
    %6 = arith.addf %3, %5 : vector<8x128xf32>
    %cst_5 = arith.constant 0.000000e+00 : f32
    %7 = vector.broadcast %cst_5 : f32 to vector<8x128xf32>
    %8 = arith.maximumf %6, %7 : vector<8x128xf32>
    %9 = arith.truncf %8 : vector<8x128xf32> to vector<8x128xbf16>
    %c0_6 = arith.constant 0 : index
    %c0_7 = arith.constant 0 : index
    %10 = vector.load %arg3[%c0_6, %c0_7] : memref<128x128xbf16, #tpu.memory_space<vmem>>, vector<128x128xbf16>
    %cst_8 = arith.constant dense<0.000000e+00> : vector<8x128xf32>
    %11 = tpu.matmul %9, %10, %cst_8 {dimension_numbers = #tpu.dot_dimension_numbers<[1], [0], [0], [1], [0, 0, 1, 1], [], []>} : vector<8x128xbf16>, vector<128x128xbf16>, vector<8x128xf32> -> vector<8x128xf32>
    %c1 = arith.constant 1 : index
    %c0_9 = arith.constant 0 : index
    %12 = vector.load %arg5[%c1, %c0_9] : memref<8x128xf32, #tpu.memory_space<vmem>>, vector<1x128xf32>
    %13 = vector.broadcast %12 : vector<1x128xf32> to vector<8x128xf32>
    %14 = arith.addf %11, %13 : vector<8x128xf32>
    %cst_10 = arith.constant 0.000000e+00 : f32
    %15 = vector.broadcast %cst_10 : f32 to vector<8x128xf32>
    %16 = arith.maximumf %14, %15 : vector<8x128xf32>
    %17 = arith.truncf %16 : vector<8x128xf32> to vector<8x128xbf16>
    %c0_11 = arith.constant 0 : index
    %c0_12 = arith.constant 0 : index
    %18 = vector.load %arg4[%c0_11, %c0_12] : memref<128x128xbf16, #tpu.memory_space<vmem>>, vector<128x128xbf16>
    %cst_13 = arith.constant dense<0.000000e+00> : vector<8x128xf32>
    %19 = tpu.matmul %17, %18, %cst_13 {dimension_numbers = #tpu.dot_dimension_numbers<[1], [0], [0], [1], [0, 0, 1, 1], [], []>} : vector<8x128xbf16>, vector<128x128xbf16>, vector<8x128xf32> -> vector<8x128xf32>
    %20 = vector.extract_strided_slice %19 {offsets = [0, 0], sizes = [8, 4], strides = [1, 1]} : vector<8x128xf32> to vector<8x4xf32>
    %c2 = arith.constant 2 : index
    %c0_14 = arith.constant 0 : index
    %21 = vector.load %arg5[%c2, %c0_14] : memref<8x128xf32, #tpu.memory_space<vmem>>, vector<1x4xf32>
    %22 = vector.broadcast %21 : vector<1x4xf32> to vector<8x4xf32>
    %23 = arith.addf %20, %22 : vector<8x4xf32>
    %c0_15 = arith.constant 0 : index
    %c0_16 = arith.constant 0 : index
    %24 = vector.load %arg6[%c0_15, %c0_16] : memref<8x4xf32, #tpu.memory_space<vmem>>, vector<8x4xf32>
    tpu.vector_store %arg6[%c0_15, %c0_16], %23 {strides = array<i32>} : memref<8x4xf32, #tpu.memory_space<vmem>>, vector<8x4xf32>,
    return
  }
  func.func @transform_0(%arg0: i32) -> (i32, i32) {
    %c0_i32 = arith.constant 0 : i32
    %c0_i32_0 = arith.constant 0 : i32
    return %arg0, %c0_i32 : i32, i32
  }
  func.func @transform_1(%arg0: i32) -> (i32, i32) {
    %c0_i32 = arith.constant 0 : i32
    %c0_i32_0 = arith.constant 0 : i32
    %c0_i32_1 = arith.constant 0 : i32
    return %c0_i32, %c0_i32_0 : i32, i32
  }
  func.func @transform_2(%arg0: i32) -> (i32, i32) {
    %c0_i32 = arith.constant 0 : i32
    %c0_i32_0 = arith.constant 0 : i32
    %c0_i32_1 = arith.constant 0 : i32
    return %c0_i32, %c0_i32_0 : i32, i32
  }
  func.func @transform_3(%arg0: i32) -> (i32, i32) {
    %c0_i32 = arith.constant 0 : i32
    %c0_i32_0 = arith.constant 0 : i32
    %c0_i32_1 = arith.constant 0 : i32
    return %c0_i32, %c0_i32_0 : i32, i32
  }
  func.func @transform_4(%arg0: i32) -> (i32, i32) {
    %c0_i32 = arith.constant 0 : i32
    %c0_i32_0 = arith.constant 0 : i32
    %c0_i32_1 = arith.constant 0 : i32
    return %c0_i32, %c0_i32_0 : i32, i32
  }
  func.func @transform_5(%arg0: i32) -> (i32, i32) {
    %c0_i32 = arith.constant 0 : i32
    %c0_i32_0 = arith.constant 0 : i32
    return %arg0, %c0_i32 : i32, i32
  }
}

</mosaic_0001>

<bundles_post_ra>
// kernel: tpu_custom_call.1
= control target key start
LH: loop header
LB: loop body
LE: loop exit
PB: predicated region body
PF: predicated region fallthrough
CT: control target
= control target key end

     0   :  { %10 = vsyncpa [#allocation3], 0  ;;  %s573_s0 = inlined_call_operand.hbm [shape: f32[8,16], index: 0, kind: input, shape index: {}]   ;;  %s574_s1 = inlined_call_operand.hbm [shape: bf16[16,128], index: 1, kind: input, shape index: {}]   ;;  %s575_s2 = inlined_call_operand.hbm [shape: bf16[128,128], index: 2, kind: input, shape index: {}]   ;;  %s576_s3 = inlined_call_operand.hbm [shape: bf16[128,128], index: 3, kind: input, shape index: {}]   ;;  %s577_s4 = inlined_call_operand.hbm [shape: f32[8,128], index: 4, kind: input, shape index: {}]   ;;  %s578_s5 = inlined_call_operand.vmem [shape: f32[8,4], index: 5, kind: output, shape index: {}]  }
   0x1   :  { %11 = vsyncpa [#allocation5], 0  ;;  %s28_s20 = sshll.u32 %s574_s1, 4  ;;  %s29_s20 = int_to_ptr.hbm [resolvable:$true] %s28_s20 }
   0x2   :  { %12 = vsyncpa [#allocation8], 0  ;;  %s518_s21 = smov [#allocation4]   ;;  %s54_s25 = sshll.u32 %s576_s3, 4  ;;  %s55_s25 = int_to_ptr.hbm [resolvable:$true] %s54_s25 }
   0x3   :  { %s30_s22 = sshll.u32 %s518_s21, 4  ;;  %s519_s26 = smov 64   ;;  %s31_s22 = int_to_ptr.vmem [resolvable:$true] %s30_s22 }
   0x4   :  { %s520_s27 = smov 4   ;;  %s521_s28 = smov [#allocation7]  }
   0x5   :  { %36 = dma.hbm_to_vmem [thread:$0]  %s29_s20, 128, %s31_s22, [#allocation5], %s519_s26, %s519_s26, %s520_s27  }
   0x6   :  { %s56_s29 = sshll.u32 %s521_s28, 4  ;;  %s18_s7 = sshll.u32 %s573_s0, 4  ;;  %s57_s29 = int_to_ptr.vmem [resolvable:$true] %s56_s29  ;;  %s19_s7 = int_to_ptr.hbm [resolvable:$true] %s18_s7 }
   0x7   :  { %62 = dma.hbm_to_vmem [thread:$0]  %s55_s25, 1024, %s57_s29, [#allocation8], %s519_s26, %s519_s26, %s520_s27  }
   0x8   :  { %s41_s9 = sshll.u32 %s575_s2, 4  ;;  %s522_s10 = smov [#allocation2]   ;;  %s42_s9 = int_to_ptr.hbm [resolvable:$true] %s41_s9 }
   0x9   :  { %s20_s11 = sshll.u32 %s522_s10, 4  ;;  %s523_s3 = smov [#allocation6]   ;;  %s21_s11 = int_to_ptr.vmem [resolvable:$true] %s20_s11 }
   0xa   :  { %23 = dma.hbm_to_vmem [thread:$0]  %s19_s7, 128, %s21_s11, [#allocation3]  }
   0xb   :  { %s43_s12 = sshll.u32 %s523_s3, 4  ;;  %s68_s15 = sshll.u32 %s577_s4, 4  ;;  %s44_s12 = int_to_ptr.vmem [resolvable:$true] %s43_s12  ;;  %s69_s15 = int_to_ptr.hbm [resolvable:$true] %s68_s15 }
   0xc   :  { %49 = dma.hbm_to_vmem [thread:$0]  %s42_s9, 1024, %s44_s12, [#allocation5], %s519_s26, %s519_s26, %s520_s27  }
   0xd   :  { %s524_s0 = smov [#allocation9]  }
   0xe   :  { %s70_s16 = sshll.u32 %s524_s0, 4  ;;  %s71_s16 = int_to_ptr.vmem [resolvable:$true] %s70_s16 }
   0xf   :  { %73 = dma.hbm_to_vmem [thread:$0]  %s69_s15, 128, %s71_s16, [#allocation8]  }
  0x10   :  { %512 = dma.done.wait [#allocation3], 128  }
  0x11   :  { %513 = vsyncadd [#allocation3], 4294967168 }
  0x12   :  { %514 = dma.done.wait [#allocation5], 1152  }
  0x13   :  { %515 = vsyncadd [#allocation5], 4294966144 }
  0x14   :  { %516 = dma.done.wait [#allocation8], 1152  }
  0x15   :  { %517 = vsyncadd [#allocation8], 4294966144  ;;  %v365_v0 = vld [vmem:[#allocation4] sm:$0xff]  ;;  %v95_v1 = vld [vmem:[#allocation2] sm:$0xff]  ;;  %vm107_vm0 = vcmask 130048   ;;  %vm287_vm1 = vcmask 31744  }
  0x16   :  { %v373_v2 = vld [vmem:[#allocation6 + $0x38] sm:$0xff]  ;;  %v96_v3 = vpack.c.bf16 %v95_v1, %v95_v1  ;;  %118 = vmatpush.bf16.msra.mxu0 %v365_v0  ;;  %v372_v4 = vld [vmem:[#allocation6 + $0x30] sm:$0xff]  ;;  %v371_v5 = vld [vmem:[#allocation6 + $0x28] sm:$0xff] }
  0x17   :  { %192 = vmatpush.bf16.msra.mxu1 %v373_v2  ;;  %v370_v6 = vld [vmem:[#allocation6 + $0x20] sm:$0xff]  ;;  %v369_v7 = vld [vmem:[#allocation6 + $0x18] sm:$0xff]  ;;  %v368_v8 = vld [vmem:[#allocation6 + $0x10] sm:$0xff] }
  0x18   :  { %v367_v9 = vld [vmem:[#allocation6 + $0x8] sm:$0xff]  ;;  %v366_v10 = vld [vmem:[#allocation6] sm:$0xff]  ;;  %v381_v11 = vld [vmem:[#allocation7 + $0x38] sm:$0xff] }
  0x19   :  { %300 = vmatmul.msk.bf16.vlgmr.msra.gmra.mxu0 %vm107_vm0, %v96_v3  ;;  %271 = vmatpush.bf16.msra.mxu2 %v381_v11  ;;  %v380_v12 = vld [vmem:[#allocation7 + $0x30] sm:$0xff]  ;;  %v379_v13 = vld [vmem:[#allocation7 + $0x28] sm:$0xff]  ;;  %v378_v14 = vld [vmem:[#allocation7 + $0x20] sm:$0xff] }
  0x1a   :  { %v377_v15 = vld [vmem:[#allocation7 + $0x18] sm:$0xff]  ;;  %v376_v16 = vld [vmem:[#allocation7 + $0x10] sm:$0xff]  ;;  %v389_v17 = vld [vmem:[#allocation9] ss:$0 sm:$0xff] }
  0x1b   :  { %193 = vmatpush.bf16.msra.mxu1 %v372_v4  ;;  %v375_v23 = vld [vmem:[#allocation7 + $0x8] sm:$0xff]  ;;  %v374_v24 = vld [vmem:[#allocation7] sm:$0xff] }
  0x1c   :  { %v390_v25 = vld [vmem:[#allocation9 + $0x1] ss:$0 sm:$0xff]  ;;  %v391_v31 = vld [vmem:[#allocation9 + $0x2] ss:$0 sm:$0xff] }
  0x1d   :  { %272 = vmatpush.bf16.msra.mxu2 %v380_v12 }
  0x1f   :  { %194 = vmatpush.bf16.msra.mxu1 %v371_v5 }
  0x21   :  { %273 = vmatpush.bf16.msra.mxu2 %v379_v13 }
  0x23   :  { %195 = vmatpush.bf16.msra.mxu1 %v370_v6 }
  0x25   :  { %274 = vmatpush.bf16.msra.mxu2 %v378_v14 }
  0x27   :  { %196 = vmatpush.bf16.msra.mxu1 %v369_v7 }
  0x29   :  { %275 = vmatpush.bf16.msra.mxu2 %v377_v15 }
  0x2b   :  { %197 = vmatpush.bf16.msra.mxu1 %v368_v8 }
  0x2d   :  { %276 = vmatpush.bf16.msra.mxu2 %v376_v16 }
  0x2f   :  { %198 = vmatpush.bf16.msra.mxu1 %v367_v9 }
  0x31   :  { %277 = vmatpush.bf16.msra.mxu2 %v375_v23 }
  0x33   :  { %199 = vmatpush.bf16.msra.mxu1 %v366_v10 }
  0x35   :  { %278 = vmatpush.bf16.msra.mxu2 %v374_v24 }
  0x96   :  { %v120_v18 = vpop.f32.mrf.mxu0 }
  0x97   :  { %v121_v19 = vadd.f32 %v389_v17, %v120_v18 }
  0x99   :  { %v124_v20 = vmax.f32 %v121_v19, 0.0 }
  0x9b   :  { %v125_v21 = vpack.c.bf16 %v124_v20, %v124_v20 }
  0x9d   :  { %200 = vmatmul.bf16.vlgmr.msra.gmra.mxu1 %v125_v21 }
  0x9e   :  { %v122_v22 = vpop.f32.mrf.mxu0 }
 0x11a   :  { %v201_v26 = vpop.f32.mrf.mxu1 }
 0x11b   :  { %v202_v27 = vadd.f32 %v390_v25, %v201_v26 }
 0x11d   :  { %v205_v28 = vmax.f32 %v202_v27, 0.0 }
 0x11f   :  { %v206_v29 = vpack.c.bf16 %v205_v28, %v205_v28 }
 0x121   :  { %279 = vmatmul.bf16.vlgmr.msra.gmra.mxu2 %v206_v29 }
 0x122   :  { %v203_v30 = vpop.f32.mrf.mxu1 }
 0x1a4   :  { %v280_v32 = vpop.f32.mrf.mxu2 }
 0x1a5   :  { %v286_v33 = vadd.f32 %v391_v31, %v280_v32 }
 0x1a7   :  { %288 = vst.msk [vmem:[%s578_s5] sm:$0xff] %vm287_vm1, %v286_v33 }
 0x1ac   :  { %v282_v34 = vpop.f32.mrf.mxu2 }
 0x1ad   :  { %293 = vsyncpa [#allocation3], 1 }
 0x1ae   :  { %294 = vsyncpa [#allocation5], 1 }
 0x1af   :  { %295 = vsyncpa [#allocation8], 1 }

</bundles_post_ra>
